<compile_context>
chip_gen: v7x
topology: tpu7x:2x2x1
jax: 0.10.0
libtpu: 0.0.40
codegen_flags: <defaults>
</compile_context>

<pallas_src>
import functools

import jax
import jax.numpy as jnp
from jax import lax
from jax.experimental import pallas as pl
from jax.experimental.pallas import tpu as pltpu


def _round_up(n, m):
    return ((n + m - 1) // m) * m


def _activation(h, activation_fn):
    if activation_fn == "relu":
        return jnp.maximum(h, 0.0)
    elif activation_fn == "tanh":
        return jnp.tanh(h)
    raise ValueError("Supported activation functions: 'relu', 'tanh'")


def _ppo_mlp_kernel(*refs, num_layers, activation_fn, matmul_dtype):
    # refs = (x_ref, w0, b0, w1, b1, ..., w_{L-1}, b_{L-1}, out_ref)
    # x_ref   : (batch_tile, input_dim)   -- natural layout, no wrapper transpose
    # w_l     : (out_l, in_l)             -- PyTorch nn.Linear layout
    # b_l     : (out_l, 1)                -- lane-broadcast bias
    # out_ref : (batch_tile, output_dim)  -- natural layout
    x_ref = refs[0]
    out_ref = refs[-1]
    param_refs = refs[1:-1]

    x = x_ref[...]  # (bt, in)
    w0 = param_refs[0][...].astype(matmul_dtype)
    b0 = param_refs[1][...]
    # Contract x's feature axis directly; result lands transposed, (out0, bt),
    # i.e. batch on the lane axis.  MXU does the "transpose" for free.
    h = lax.dot_general(
        w0, x.astype(matmul_dtype),
        dimension_numbers=(((1,), (1,)), ((), ())),
        preferred_element_type=jnp.float32,
    ) + b0
    if num_layers > 1:
        h = _activation(h, activation_fn)

    for li in range(1, num_layers):
        w = param_refs[2 * li][...].astype(matmul_dtype)      # (out, in)
        b = param_refs[2 * li + 1][...]                       # (out, 1)
        h = jnp.dot(w, h.astype(matmul_dtype),
                    preferred_element_type=jnp.float32) + b
        if li < num_layers - 1:
            h = _activation(h, activation_fn)

    # Softmax over the feature axis (PyTorch dim=1) == axis 0 here (sublanes).
    m = jnp.max(h, axis=0, keepdims=True)
    e = jnp.exp(h - m)
    denom = jnp.sum(e, axis=0, keepdims=True)
    p = e / denom  # exact divide: mem-bound kernel, exact reciprocal is free

    # Tiny (out_dim, bt) tile -> natural (bt, out_dim) layout in-kernel (XLU,
    # idle slot) so the store and the wrapper need no extra HBM transpose.
    out_ref[...] = p.T.astype(out_ref.dtype)


def _pick_batch_tile(batch):
    if batch <= 4096:
        # Single grid step: the ~0.35us per-step overhead dominates the tiny
        # DMAs at these sizes, so don't split (single-TC v5e/v6e advice).
        return batch
    # Large batches: big tiles amortize per-step overhead; keep >= 4 steps so
    # v7x's two TensorCores get balanced work.
    return min(16384, _round_up(pl.cdiv(batch, 4), 512))


def ppo_network_forward(x, weights, biases, activation_fn, *, batch_tile=None,
                        matmul_dtype=jnp.float32):
    """PPO actor MLP forward pass (Linear+act ... Linear, Softmax(dim=1)).

    Args:
      x: (batch, input_dim) float32 observations (natural layout).
      weights: list of (out_dim, in_dim) arrays (PyTorch nn.Linear layout).
      biases:  list of (out_dim, 1) arrays.
      activation_fn: "relu" or "tanh".
      batch_tile: rows per grid step (default: large, overhead-amortizing).
      matmul_dtype: dtype fed to the MXU (f32 default; bf16 optional).
    Returns:
      (batch, output_dim) float32 action probabilities.
    """
    batch, input_dim = x.shape
    num_layers = len(weights)
    output_dim = weights[-1].shape[0]

    if batch_tile is None:
        batch_tile = _pick_batch_tile(batch)
    batch_tile = min(batch_tile, batch)

    grid = (pl.cdiv(batch, batch_tile),)  # ragged last block is fine: softmax
    # is per-row and OOB output rows are dropped on writeback.

    kernel = functools.partial(
        _ppo_mlp_kernel, num_layers=num_layers, activation_fn=activation_fn,
        matmul_dtype=matmul_dtype,
    )

    # x / out are tiled along the batch axis; weights & biases are tiny and
    # stay resident in VMEM (constant index_map) for every grid step.
    in_specs = [pl.BlockSpec((batch_tile, input_dim), lambda i: (i, 0))]
    params = []
    for w, b in zip(weights, biases):
        in_specs.append(pl.BlockSpec(w.shape, lambda i: (0, 0)))
        in_specs.append(pl.BlockSpec(b.shape, lambda i: (0, 0)))
        params.extend([w, b])
    out_spec = pl.BlockSpec((batch_tile, output_dim), lambda i: (i, 0))

    # Advisory cost estimate (actual, un-padded work).
    layer_dims = [(w.shape[1], w.shape[0]) for w in weights]  # (in, out)
    flops = 2 * batch * sum(i * o for i, o in layer_dims)
    transcendentals = batch * output_dim  # softmax exp
    if activation_fn == "tanh":
        transcendentals += batch * sum(o for _, o in layer_dims[:-1])
    param_bytes = sum(w.size + b.size for w, b in zip(weights, biases)) * 4
    bytes_accessed = (x.size + batch * output_dim) * 4 + param_bytes
    cost = pl.CostEstimate(
        flops=int(flops),
        transcendentals=int(transcendentals),
        bytes_accessed=int(bytes_accessed),
    )

    # Raise the scoped VMEM limit for big tiles (v5e default is only 16 MiB;
    # 48 MiB is safely under every generation's physical VMEM).
    vmem_limit = (48 * 1024 * 1024) if batch_tile >= 4096 else None

    out = pl.pallas_call(
        kernel,
        out_shape=jax.ShapeDtypeStruct((batch, output_dim), jnp.float32),
        grid_spec=pltpu.PrefetchScalarGridSpec(
            num_scalar_prefetch=0,
            grid=grid,
            in_specs=in_specs,
            out_specs=out_spec,
        ),
        compiler_params=pltpu.CompilerParams(
            dimension_semantics=("parallel",),
            vmem_limit_bytes=vmem_limit,
        ),
        cost_estimate=cost,
    )(x, *params)
    return out


def init_ppo_params(key, input_dim, output_dim, hidden_dims):
    """Deterministic parameter init matching nn.Linear shapes.

    Weights stored PyTorch-style: (out_features, in_features); biases
    as (out_features, 1).  Uniform(+-1/sqrt(fan_in)).
    """
    layer_sizes = (
        [input_dim] + hidden_dims + [output_dim]
        if hidden_dims
        else [input_dim, output_dim]
    )
    weights, biases = [], []
    for i in range(len(layer_sizes) - 1):
        fan_in, fan_out = layer_sizes[i], layer_sizes[i + 1]
        key, kw, kb = jax.random.split(key, 3)
        bound = 1.0 / jnp.sqrt(fan_in)
        w = jax.random.uniform(
            kw, (fan_out, fan_in), jnp.float32, minval=-bound, maxval=bound)
        b = jax.random.uniform(
            kb, (fan_out, 1), jnp.float32, minval=-bound, maxval=bound)
        weights.append(w)
        biases.append(b)
    return weights, biases


def ppo_network_ref(x, weights, biases, activation_fn):
    """Pure-JAX reference (matches the PyTorch module)."""
    h = x
    for li, (w, b) in enumerate(zip(weights, biases)):
        h = h @ w.T + b.reshape(1, -1)
        if li < len(weights) - 1:
            h = jnp.maximum(h, 0.0) if activation_fn == "relu" else jnp.tanh(h)
    return jax.nn.softmax(h, axis=1)


if __name__ == "__main__":
    key = jax.random.PRNGKey(0)

    # Case 1: small shapes consistent with the module (tanh, two hidden layers).
    batch, input_dim, output_dim = 8, 16, 8
    hidden_dims = [32, 32]
    key, kx = jax.random.split(key)
    x = jax.random.normal(kx, (batch, input_dim), jnp.float32)
    weights, biases = init_ppo_params(key, input_dim, output_dim, hidden_dims)

    out = jax.block_until_ready(ppo_network_forward(x, weights, biases, "tanh"))
    ref = ppo_network_ref(x, weights, biases, "tanh")
    assert out.shape == (batch, output_dim)
    assert jnp.allclose(out, ref, atol=1e-4, rtol=1e-4), "mismatch vs reference"
    assert jnp.allclose(jnp.sum(out, axis=1), 1.0, atol=1e-4)

    # Case 2: relu, no hidden layers, multi-step grid (exercises the tiling).
    batch2 = 32
    key, kx2, kp2 = jax.random.split(key, 3)
    x2 = jax.random.normal(kx2, (batch2, input_dim), jnp.float32)
    w2, b2 = init_ppo_params(kp2, input_dim, output_dim, [])
    out2 = jax.block_until_ready(
        ppo_network_forward(x2, w2, b2, "relu", batch_tile=16))
    ref2 = ppo_network_ref(x2, w2, b2, "relu")
    assert out2.shape == (batch2, output_dim)
    assert jnp.allclose(out2, ref2, atol=1e-4, rtol=1e-4), "mismatch (case 2)"
    assert jnp.allclose(jnp.sum(out2, axis=1), 1.0, atol=1e-4)

    print("KERNEL_OK")
</pallas_src>

<mosaic_0001>
module attributes {stable_mosaic.version = 11 : i64} {
  func.func @_ppo_mlp_kernel(%arg0: i32, %arg1: memref<8x16xf32, #tpu.memory_space<vmem>>, %arg2: memref<32x16xf32, #tpu.memory_space<vmem>>, %arg3: memref<32x1xf32, #tpu.memory_space<vmem>>, %arg4: memref<32x32xf32, #tpu.memory_space<vmem>>, %arg5: memref<32x1xf32, #tpu.memory_space<vmem>>, %arg6: memref<8x32xf32, #tpu.memory_space<vmem>>, %arg7: memref<8x1xf32, #tpu.memory_space<vmem>>, %arg8: memref<8x8xf32, #tpu.memory_space<vmem>>) attributes {dimension_semantics = [#tpu.dimension_semantics<parallel>], iteration_bounds = array<i64: 1>, scalar_prefetch = 0 : i64, scratch_operands = 0 : i64, tpu.core_type = #tpu.core_type<tc>, window_params = [{transform_indices = @transform_0, window_bounds = array<i64: 8, 16>}, {pipeline_mode = #tpu.pipeline_mode<synchronous>, transform_indices = @transform_1, window_bounds = array<i64: 32, 16>}, {pipeline_mode = #tpu.pipeline_mode<synchronous>, transform_indices = @transform_2, window_bounds = array<i64: 32, 1>}, {pipeline_mode = #tpu.pipeline_mode<synchronous>, transform_indices = @transform_3, window_bounds = array<i64: 32, 32>}, {pipeline_mode = #tpu.pipeline_mode<synchronous>, transform_indices = @transform_4, window_bounds = array<i64: 32, 1>}, {pipeline_mode = #tpu.pipeline_mode<synchronous>, transform_indices = @transform_5, window_bounds = array<i64: 8, 32>}, {pipeline_mode = #tpu.pipeline_mode<synchronous>, transform_indices = @transform_6, window_bounds = array<i64: 8, 1>}, {transform_indices = @transform_7, window_bounds = array<i64: 8, 8>}]} {
    %c0 = arith.constant 0 : index
    %c0_0 = arith.constant 0 : index
    %0 = vector.load %arg1[%c0, %c0_0] : memref<8x16xf32, #tpu.memory_space<vmem>>, vector<8x16xf32>
    %c0_1 = arith.constant 0 : index
    %c0_2 = arith.constant 0 : index
    %1 = vector.load %arg2[%c0_1, %c0_2] : memref<32x16xf32, #tpu.memory_space<vmem>>, vector<32x16xf32>
    %c0_3 = arith.constant 0 : index
    %c0_4 = arith.constant 0 : index
    %2 = vector.load %arg3[%c0_3, %c0_4] : memref<32x1xf32, #tpu.memory_space<vmem>>, vector<32x1xf32>
    %cst = arith.constant dense<0.000000e+00> : vector<32x8xf32>
    %3 = tpu.matmul %1, %0, %cst {dimension_numbers = #tpu.dot_dimension_numbers<[1], [1], [0], [0], [0, 0, 1, 0], [], []>} : vector<32x16xf32>, vector<8x16xf32>, vector<32x8xf32> -> vector<32x8xf32>
    %4 = vector.broadcast %2 : vector<32x1xf32> to vector<32x8xf32>
    %5 = arith.addf %3, %4 : vector<32x8xf32>
    %6 = math.tanh %5 : vector<32x8xf32>
    %c0_5 = arith.constant 0 : index
    %c0_6 = arith.constant 0 : index
    %7 = vector.load %arg4[%c0_5, %c0_6] : memref<32x32xf32, #tpu.memory_space<vmem>>, vector<32x32xf32>
    %c0_7 = arith.constant 0 : index
    %c0_8 = arith.constant 0 : index
    %8 = vector.load %arg5[%c0_7, %c0_8] : memref<32x1xf32, #tpu.memory_space<vmem>>, vector<32x1xf32>
    %cst_9 = arith.constant dense<0.000000e+00> : vector<32x8xf32>
    %9 = tpu.matmul %7, %6, %cst_9 {dimension_numbers = #tpu.dot_dimension_numbers<[1], [0], [0], [1], [0, 0, 1, 1], [], []>} : vector<32x32xf32>, vector<32x8xf32>, vector<32x8xf32> -> vector<32x8xf32>
    %10 = vector.broadcast %8 : vector<32x1xf32> to vector<32x8xf32>
    %11 = arith.addf %9, %10 : vector<32x8xf32>
    %12 = math.tanh %11 : vector<32x8xf32>
    %c0_10 = arith.constant 0 : index
    %c0_11 = arith.constant 0 : index
    %13 = vector.load %arg6[%c0_10, %c0_11] : memref<8x32xf32, #tpu.memory_space<vmem>>, vector<8x32xf32>
    %c0_12 = arith.constant 0 : index
    %c0_13 = arith.constant 0 : index
    %14 = vector.load %arg7[%c0_12, %c0_13] : memref<8x1xf32, #tpu.memory_space<vmem>>, vector<8x1xf32>
    %cst_14 = arith.constant dense<0.000000e+00> : vector<8x8xf32>
    %15 = tpu.matmul %13, %12, %cst_14 {dimension_numbers = #tpu.dot_dimension_numbers<[1], [0], [0], [1], [0, 0, 1, 1], [], []>} : vector<8x32xf32>, vector<32x8xf32>, vector<8x8xf32> -> vector<8x8xf32>
    %16 = vector.broadcast %14 : vector<8x1xf32> to vector<8x8xf32>
    %17 = arith.addf %15, %16 : vector<8x8xf32>
    %cst_15 = arith.constant dense<0xFF800000> : vector<8xf32>
    %18 = vector.multi_reduction <maximumf>, %17, %cst_15 [0] : vector<8x8xf32> to vector<8xf32>
    %19 = vector.shape_cast %18 : vector<8xf32> to vector<1x8xf32>
    %20 = vector.broadcast %19 : vector<1x8xf32> to vector<8x8xf32>
    %21 = arith.subf %17, %20 : vector<8x8xf32>
    %22 = math.exp %21 : vector<8x8xf32>
    %cst_16 = arith.constant dense<0.000000e+00> : vector<8xf32>
    %23 = vector.multi_reduction <add>, %22, %cst_16 [0] : vector<8x8xf32> to vector<8xf32>
    %24 = vector.shape_cast %23 : vector<8xf32> to vector<1x8xf32>
    %25 = vector.broadcast %24 : vector<1x8xf32> to vector<8x8xf32>
    %26 = arith.divf %22, %25 : vector<8x8xf32>
    %27 = tpu.transpose %26, [1, 0] : vector<8x8xf32> -> vector<8x8xf32>
    %c0_17 = arith.constant 0 : index
    %c0_18 = arith.constant 0 : index
    %28 = vector.load %arg8[%c0_17, %c0_18] : memref<8x8xf32, #tpu.memory_space<vmem>>, vector<8x8xf32>
    tpu.vector_store %arg8[%c0_17, %c0_18], %27 {strides = array<i32>} : memref<8x8xf32, #tpu.memory_space<vmem>>, vector<8x8xf32>,
    return
  }
  func.func @transform_0(%arg0: i32) -> (i32, i32) {
    %c0_i32 = arith.constant 0 : i32
    %c0_i32_0 = arith.constant 0 : i32
    return %arg0, %c0_i32 : i32, i32
  }
  func.func @transform_1(%arg0: i32) -> (i32, i32) {
    %c0_i32 = arith.constant 0 : i32
    %c0_i32_0 = arith.constant 0 : i32
    %c0_i32_1 = arith.constant 0 : i32
    return %c0_i32, %c0_i32_0 : i32, i32
  }
  func.func @transform_2(%arg0: i32) -> (i32, i32) {
    %c0_i32 = arith.constant 0 : i32
    %c0_i32_0 = arith.constant 0 : i32
    %c0_i32_1 = arith.constant 0 : i32
    return %c0_i32, %c0_i32_0 : i32, i32
  }
  func.func @transform_3(%arg0: i32) -> (i32, i32) {
    %c0_i32 = arith.constant 0 : i32
    %c0_i32_0 = arith.constant 0 : i32
    %c0_i32_1 = arith.constant 0 : i32
    return %c0_i32, %c0_i32_0 : i32, i32
  }
  func.func @transform_4(%arg0: i32) -> (i32, i32) {
    %c0_i32 = arith.constant 0 : i32
    %c0_i32_0 = arith.constant 0 : i32
    %c0_i32_1 = arith.constant 0 : i32
    return %c0_i32, %c0_i32_0 : i32, i32
  }
  func.func @transform_5(%arg0: i32) -> (i32, i32) {
    %c0_i32 = arith.constant 0 : i32
    %c0_i32_0 = arith.constant 0 : i32
    %c0_i32_1 = arith.constant 0 : i32
    return %c0_i32, %c0_i32_0 : i32, i32
  }
  func.func @transform_6(%arg0: i32) -> (i32, i32) {
    %c0_i32 = arith.constant 0 : i32
    %c0_i32_0 = arith.constant 0 : i32
    %c0_i32_1 = arith.constant 0 : i32
    return %c0_i32, %c0_i32_0 : i32, i32
  }
  func.func @transform_7(%arg0: i32) -> (i32, i32) {
    %c0_i32 = arith.constant 0 : i32
    %c0_i32_0 = arith.constant 0 : i32
    return %arg0, %c0_i32 : i32, i32
  }
}

</mosaic_0001>

<bundles_post_ra>
// kernel: tpu_custom_call.1
= control target key start
LH: loop header
LB: loop body
LE: loop exit
PB: predicated region body
PF: predicated region fallthrough
CT: control target
= control target key end

     0   :  { %vm56_vm0 = vcmask 130048   ;;  %v564_v4 = vmov 0   ;;  %s692_s0 = inlined_call_operand.vmem [shape: f32[8,16], index: 0, kind: input, shape index: {}]   ;;  %s693_s1 = inlined_call_operand.vmem [shape: f32[32,16], index: 1, kind: input, shape index: {}]   ;;  %s694_s2 = inlined_call_operand.vmem [shape: f32[32,1], index: 2, kind: input, shape index: {}]   ;;  %s695_s3 = inlined_call_operand.vmem [shape: f32[32,32], index: 3, kind: input, shape index: {}]   ;;  %s696_s4 = inlined_call_operand.vmem [shape: f32[32,1], index: 4, kind: input, shape index: {}]   ;;  %s697_s5 = inlined_call_operand.vmem [shape: f32[8,32], index: 5, kind: input, shape index: {}]   ;;  %s698_s6 = inlined_call_operand.vmem [shape: f32[8,1], index: 6, kind: input, shape index: {}]   ;;  %s699_s7 = inlined_call_operand.hbm [shape: f32[8,8], index: 7, kind: output, shape index: {}]  }
   0x1   :  { %v27_v0 = vld [vmem:[%s692_s0] sm:$0xff]  ;;  %v29_v3 = vld [vmem:[%s693_s1 + $0x8] sm:$0xff]  ;;  %518 = vset.pattern.permute.xlu0 %v564_v4  ;;  %v34_v5 = vld [vmem:[%s694_s2 + $0x10] sm:$0xff]  ;;  %519 = vset.pattern.permute.xlu1 %v564_v4 }
   0x2   :  { %v28_v1 = vld [vmem:[%s693_s1] sm:$0xff]  ;;  %466 = vmatprep.subr.msk.mxu0 %vm56_vm0, %v27_v0  ;;  %v30_v6 = vld [vmem:[%s693_s1 + $0x10] sm:$0xff]  ;;  %v33_v7 = vld [vmem:[%s694_s2 + $0x8] sm:$0xff]  ;;  %48 = vperm.xlu1 %519, %v34_v5  }
   0x3   :  { %468 = vmatprep.mubr.msk.f32.mxu0 %vm56_vm0, %v28_v1  ;;  %v32_v2 = vld [vmem:[%s694_s2] sm:$0xff]  ;;  %467 = vmatpush3.xpose.msk.msra.mxu0 %vm56_vm0, %v27_v0 }
   0x4   :  { %38 = vperm.xlu0 %518, %v32_v2  }
   0x5   :  { %12 = vsyncpa [#allocation3], 0  ;;  %v35_v8 = vld [vmem:[%s694_s2 + $0x18] sm:$0xff]  ;;  %v165_v10 = vld [vmem:[%s696_s4] sm:$0xff]  ;;  %vm189_vm1 = vcmask 261120   ;;  %v565_v37 = vmov 0.0|0.0  }
   0x6   :  { %469 = vmatmul.mubr.msk.f32.vlgmr.msra.gmra.mrb[0].mxu0 %vm56_vm0, %v29_v3  ;;  %v31_v9 = vld [vmem:[%s693_s1 + $0x18] sm:$0xff]  ;;  %53 = vperm.xlu1 %519, %v35_v8   ;;  %v166_v11 = vld [vmem:[%s696_s4 + $0x8] sm:$0xff]  ;;  %v167_v12 = vld [vmem:[%s696_s4 + $0x10] sm:$0xff]  ;;  %vm566_vm2 = vmmov 0   ;;  %v567_v38 = vmov 0.0   ;;  %vm371_vm3 = vcmask 64512  }
   0x7   :  { %471 = vmatprep.mubr.msk.f32.mxu0 %vm56_vm0, %v30_v6  ;;  %v168_v13 = vld [vmem:[%s696_s4 + $0x18] sm:$0xff]  ;;  %v292_v14 = vld [vmem:[%s698_s6] sm:$0xff]  ;;  %v162_v34 = vld [vmem:[%s695_s3 + $0x8] sm:$0xff]  ;;  %507 = vmatprep.subr.bf16.mxu0 %v565_v37 }
   0x8   :  { %43 = vperm.xlu0 %518, %v33_v7   ;;  %v161_v15 = vld [vmem:[%s695_s3] sm:$0xff]  ;;  %v163_v35 = vld [vmem:[%s695_s3 + $0x10] sm:$0xff]  ;;  %v164_v36 = vld [vmem:[%s695_s3 + $0x18] sm:$0xff] }
   0x9   :  { %482 = vmatprep.mubr.msk.f32.mxu1 %vm189_vm1, %v161_v15  ;;  %v291_v57 = vld [vmem:[%s697_s5] sm:$0xff]  ;;  %s568_s5 = smov [#allocation2]  }
   0xa   :  { %472 = vmatmul.mubr.msk.f32.gmra.mrb[2].mxu0 %vm56_vm0, %v31_v9  ;;  %176 = vperm.xlu1 %519, %v166_v11   ;;  %s430_s9 = sshll.u32 %s568_s5, 4  ;;  %s431_s9 = int_to_ptr.vmem [resolvable:$true] %s430_s9 }
   0xb   :  { %496 = vmatprep.mubr.msk.f32.mxu0 %vm566_vm2, %v567_v38  ;;  %s540_s10 = scalar_lea.vmem %s431_s9, 128  ;;  %p545_p1 = scmp.lt.s32.totalorder %s431_s9, %s431_s9 }
   0xc   :  { %171 = vperm.xlu0 %518, %v165_v10   ;;  %p541_p0 = scmp.ne.s32.totalorder %s431_s9, %s540_s10  ;;  %p546_p2 = scmp.lt.s32.totalorder %s540_s10, %s540_s10 }
   0xe   :  { %186 = vperm.xlu1 %519, %v168_v13   ;;  %p547_p3 = por %p546_p2, %p545_p1 }
  0x10   :  { %181 = vperm.xlu0 %518, %v167_v12   ;;  %p548_p4 = pnand %p547_p3, %p541_p0 }
  0x14   :  { %295 = vperm.xlu0 %518, %v292_v14  }
  0x81   :  { %v49_v17 = vpop.permute.xlu1 %48 }
  0x83   :  { %v39_v16 = vpop.permute.xlu0 %38 }
  0x85   :  { %v54_v23 = vpop.permute.xlu1 %53 }
  0x87   :  { %v44_v18 = vpop.permute.xlu0 %43 }
  0x89   :  { %v177_v39 = vpop.permute.xlu1 %176 }
  0x8b   :  { %v172_v40 = vpop.permute.xlu0 %171 }
  0x8d   :  { %v187_v45 = vpop.permute.xlu1 %186 }
  0x8f   :  { %v182_v47 = vpop.permute.xlu0 %181 }
  0x93   :  { %v296_v58 = vpop.permute.xlu0 %295 }
  0xd9   :  { %v470_v19 = vpop.f32.mrb[0].mxu0 }
  0xda   :  { %v144_v20 = vadd.f32 %v470_v19, %v44_v18  ;;  %v138_v21 = vpop.f32.mrb[1].mxu0 }
  0xdb   :  { %v139_v22 = vadd.f32 %v138_v21, %v39_v16 }
  0xdc   :  { %520 = vtanh.f32 %v144_v20 }
  0xdd   :  { %522 = vtanh.f32 %v139_v22  ;;  %v473_v24 = vpop.f32.mrb[2].mxu0 }
  0xde   :  { %v154_v25 = vadd.f32 %v473_v24, %v54_v23  ;;  %v148_v26 = vpop.f32.mrb[3].mxu0 }
  0xdf   :  { %v149_v27 = vadd.f32 %v148_v26, %v49_v17 }
  0xe0   :  { %524 = vtanh.f32 %v154_v25 }
  0xe1   :  { %526 = vtanh.f32 %v149_v27 }
  0xe6   :  { %v521_v28 = vpop.eup %520 }
  0xe7   :  { %v523_v29 = vpop.eup %522 }
  0xe8   :  { %v499_v30 = vpack.c.bf16 %v521_v28, %v523_v29 }
  0xea   :  { %v525_v31 = vpop.eup %524  ;;  %500 = vmatprep.subr.bf16.mxu1 %v499_v30 }
  0xeb   :  { %v527_v32 = vpop.eup %526  ;;  %502 = vmatpush3.bf16.msra.mxu1 %v499_v30 }
  0xec   :  { %v503_v33 = vpack.c.bf16 %v525_v31, %v527_v32 }
  0xee   :  { %504 = vmatprep.subr.bf16.mxu1 %v503_v33 }
  0xef   :  { %506 = vmatpush3.bf16.msra.mxu1 %v503_v33 }
  0xf2   :  { %483 = vmatmul.mubr.msk.f32.vlgmr.msra.gmra.mrb[0].mxu1 %vm189_vm1, %v162_v34 }
  0xf3   :  { %485 = vmatprep.mubr.msk.f32.mxu1 %vm189_vm1, %v163_v35 }
  0xf6   :  { %486 = vmatmul.mubr.msk.f32.gmra.mrb[2].mxu1 %vm189_vm1, %v164_v36 }
 0x1c5   :  { %v484_v41 = vpop.f32.mrb[0].mxu1 }
 0x1c6   :  { %v274_v42 = vadd.f32 %v484_v41, %v177_v39  ;;  %v268_v43 = vpop.f32.mrb[1].mxu1 }
 0x1c7   :  { %v269_v44 = vadd.f32 %v268_v43, %v172_v40 }
 0x1c8   :  { %528 = vtanh.f32 %v274_v42 }
 0x1c9   :  { %530 = vtanh.f32 %v269_v44  ;;  %v487_v46 = vpop.f32.mrb[2].mxu1 }
 0x1ca   :  { %v284_v48 = vadd.f32 %v487_v46, %v187_v45  ;;  %v278_v49 = vpop.f32.mrb[3].mxu1 }
 0x1cb   :  { %v279_v50 = vadd.f32 %v278_v49, %v182_v47 }
 0x1cc   :  { %532 = vtanh.f32 %v284_v48 }
 0x1cd   :  { %534 = vtanh.f32 %v279_v50 }
 0x1d2   :  { %v529_v51 = vpop.eup %528 }
 0x1d3   :  { %v531_v52 = vpop.eup %530 }
 0x1d4   :  { %v508_v53 = vpack.c.bf16 %v529_v51, %v531_v52 }
 0x1d6   :  { %v533_v54 = vpop.eup %532  ;;  %509 = vmatpush3.bf16.msra.mxu0 %v508_v53 }
 0x1d7   :  { %v535_v55 = vpop.eup %534  ;;  %510 = vmatprep.subr.bf16.mxu0 %v565_v37 }
 0x1d8   :  { %v511_v56 = vpack.c.bf16 %v533_v54, %v535_v55 }
 0x1da   :  { %512 = vmatpush3.bf16.msra.mxu0 %v511_v56 }
 0x1dd   :  { %497 = vmatmul.mubr.msk.f32.vlgmr.msra.gmra.mrb[4].mxu0 %vm189_vm1, %v291_v57 }
 0x2b0   :  { %v367_v59 = vpop.f32.mrb[4].mxu0 }
 0x2b1   :  { %v368_v60 = vadd.f32 %v367_v59, %v296_v58  ;;  %v498_v61 = vpop.f32.mrb[5].mxu0 }
 0x2b3   :  { %v372_v62 = vsel %vm371_vm3, %v368_v60, -inf }
 0x2b4   :  { %v373_v63 = vrot.slane %v372_v62, 4 }
 0x2b6   :  { %v374_v0 = vmax.f32 %v372_v62, %v373_v63 }
 0x2b8   :  { %v375_v1 = vrot.slane %v374_v0, 2 }
 0x2ba   :  { %v376_v2 = vmax.f32 %v374_v0, %v375_v1 }
 0x2bc   :  { %v377_v3 = vrot.slane %v376_v2, 1 }
 0x2be   :  { %v378_v4 = vmax.f32 %v376_v2, %v377_v3 }
 0x2c0   :  { %v379_v5 = vsub.f32 %v368_v60, %v378_v4 }
 0x2c2   :  { %v380_v6 = vmul.f32 1.442695, %v379_v5 }
 0x2c4   :  { %536 = vpow2.f32 %v380_v6 }
 0x2ce   :  { %v537_v7 = vpop.eup %536 }
 0x2cf   :  { %v382_v8 = vsel %vm371_vm3, %v537_v7, 0.0 }
 0x2d0   :  { %v383_v9 = vrot.slane %v382_v8, 4 }
 0x2d2   :  { %v384_v10 = vadd.f32 %v383_v9, %v382_v8 }
 0x2d4   :  { %v385_v11 = vrot.slane %v384_v10, 2 }
 0x2d6   :  { %v386_v12 = vadd.f32 %v385_v11, %v384_v10 }
 0x2d8   :  { %v387_v13 = vrot.slane %v386_v12, 1 }
 0x2da   :  { %v388_v14 = vadd.f32 %v387_v13, %v386_v12 }
 0x2dc   :  { %538 = vrcp.f32 %v388_v14 }
 0x2e6   :  { %v539_v15 = vpop.eup %538 }
 0x2e7   :  { %v390_v16 = vmul.f32 %v539_v15, %v537_v7 }
 0x2e9   :  { %391 = vxpose.xlu1.b32.start.end [1/1] (short) (narrow) %v390_v16, 8 }
 0x369   :  { %v407_v17 = vpop.trf.xlu1 }
 0x36a   :  { %423 = vst.msk [vmem:[#allocation2] sm:$0xff] %vm371_vm3, %v407_v17 }
 0x36b   :  { %551 = shalt.err (!%p548_p4)
}
 0x36c   :  { %s552_s13 = scalar_lea.hbm %s699_s7, 128 }
 0x36d   :  { %p553_p5 = scmp.ne.s32.totalorder %s699_s7, %s552_s13  ;;  %p556_p6 = scmp.lt.u32.totalorder %s552_s13, %s699_s7 }
 0x36f   :  { %p558_p7 = pnand %p556_p6, %p553_p5 }
 0x371   :  { %561 = shalt.err (!%p558_p7)
}
 0x372   :  { %433 = dma.vmem_to_hbm [thread:$0]  %s431_s9, 128, %s699_s7, [#allocation3]  }
 0x373   :  { %562 = dma.done.wait [#allocation3], 128  }
 0x374   :  { %563 = vsyncadd [#allocation3], 4294967168 }
 0x375   :  { %437 = vsyncpa [#allocation3], 1 }

</bundles_post_ra>
